<compile_context>
chip_gen: v7x
topology: tpu7x:2x2x1
jax: 0.10.0
libtpu: 0.0.40
codegen_flags: <defaults>
</compile_context>

<pallas_src>
import functools

import jax
import jax.numpy as jnp
from jax import lax
from jax.experimental import pallas as pl
from jax.experimental.pallas import tpu as pltpu

MARGIN = 1.0
TEMPERATURE = 0.5  # unused by forward(); kept for parity with the module ctor

_BIG_NORM = 1.0e6              # padded squared norm -> dist >> MARGIN -> hinge term is 0
_ROW_PAD_LABEL = -(2 ** 31)    # row / col pad sentinels differ so padded pairs never match
_COL_PAD_LABEL = -(2 ** 31) + 1


def _round_up(a: int, b: int) -> int:
    return (a + b - 1) // b * b


def _contrastive_loss_kernel(xr_ref, xct_ref, rn_ref, lr_ref, lc_ref, cn_ref,
                             out_ref, acc_ref, *, bf16_matmul):
    # xr_ref : (T, D) f32  row tile of features
    # xct_ref: (D, T) f32  col tile of features, pre-transposed in the wrapper
    # rn_ref : (T, 1) f32  row squared norms (precomputed, padded with _BIG_NORM)
    # lr_ref : (T, 1) i32  row labels (padded with _ROW_PAD_LABEL)
    # lc_ref : (1, T) i32  col labels, lane-dense (padded with _COL_PAD_LABEL)
    # cn_ref : (1, T) f32  col squared norms, lane-dense (padded with _BIG_NORM)
    # out_ref: (1, 8, 128) f32  per-row-tile partial sum (broadcast scalar)
    # acc_ref: (T, T) f32  VMEM elementwise accumulator (per row tile)
    j = pl.program_id(1)

    @pl.when(j == 0)
    def _init():
        acc_ref[...] = jnp.zeros_like(acc_ref)

    xr = xr_ref[...]
    xct = xct_ref[...]
    if bf16_matmul:  # static Python switch (only when D is large; MXU is bf16-native)
        xr = xr.astype(jnp.bfloat16)
        xct = xct.astype(jnp.bfloat16)

    # Squared pairwise distances via the Gram matrix:
    #   d2_ij = ||x_i||^2 + ||x_j||^2 - 2 <x_i, x_j>
    gram = lax.dot_general(xr, xct, (((1,), (0,)), ((), ())),
                           preferred_element_type=jnp.float32)          # (T, T) on MXU
    sq_dist = jnp.maximum(rn_ref[...] + cn_ref[...] - 2.0 * gram, 0.0)

    dist = jnp.sqrt(sq_dist)                                            # EUP; feeds hinge only
    hinge = jnp.maximum(MARGIN - dist, 0.0)

    # Positive pairs -> d^2 (== sq_dist); negative pairs -> clamp(margin - d, 0)^2.
    # Padded rows/cols: labels never match and dist >> margin, so they contribute 0.
    same = lr_ref[...] == lc_ref[...]                                   # (T,1)==(1,T) -> (T,T)
    acc_ref[...] += jnp.where(same, sq_dist, hinge * hinge)

    @pl.when(j == pl.num_programs(1) - 1)
    def _finalize():
        total = jnp.sum(acc_ref[...])                                   # once per row tile
        out_ref[...] = jnp.full((1, 8, 128), total, dtype=jnp.float32)


def custom_contrastive_loss(features, labels, *, tile=512):
    """features: (N, D) float, labels: (N,) int -> scalar float32 mean loss."""
    n, d = features.shape
    x = features if features.dtype == jnp.float32 else features.astype(jnp.float32)
    lab = labels if labels.dtype == jnp.int32 else labels.astype(jnp.int32)

    # Single full-size tile for small batches; lane-aligned tiles otherwise.
    if n <= tile:
        t = max(8, _round_up(n, 8))
    else:
        t = max(128, (tile // 128) * 128)
        if d >= 2048 and t > 256:
            t = 256  # keep double-buffered feature tiles within v7x's 64 MiB VMEM
    n_pad = _round_up(n, t)
    grid_i = n_pad // t
    grid = (grid_i, grid_i)

    # Precompute squared norms once; pad with sentinels so no in-kernel mask is needed.
    sq = jnp.sum(x * x, axis=1)                    # (n,)
    pad = n_pad - n
    if pad:
        x = jnp.pad(x, ((0, pad), (0, 0)))                                   # zero rows
        sq = jnp.pad(sq, (0, pad), constant_values=_BIG_NORM)
        lab_row = jnp.pad(lab, (0, pad), constant_values=_ROW_PAD_LABEL)
        lab_col = jnp.pad(lab, (0, pad), constant_values=_COL_PAD_LABEL)
    else:
        lab_row = lab
        lab_col = lab

    xt = x.T                                       # (D, n_pad): transpose once in XLA
    rn = sq.reshape(n_pad, 1)                      # row squared norms
    cn = sq.reshape(1, n_pad)                      # col squared norms (lane-dense)
    lr = lab_row.reshape(n_pad, 1)
    lc = lab_col.reshape(1, n_pad)                 # lane-dense labels

    bf16_matmul = d >= 512
    kernel = functools.partial(_contrastive_loss_kernel, bf16_matmul=bf16_matmul)

    # Explicit VMEM budget: 2 operands x 2 pipeline buffers + accumulator + intermediates.
    vmem_est = 16 * t * d + 40 * t * t + (2 << 20)
    vmem_limit = int(min(64 << 20, max(32 << 20, vmem_est)))

    out = pl.pallas_call(
        kernel,
        out_shape=jax.ShapeDtypeStruct((grid_i, 8, 128), jnp.float32),
        grid=grid,
        in_specs=[
            pl.BlockSpec((t, d), lambda i, j: (i, 0)),   # X row tile (resident along j)
            pl.BlockSpec((d, t), lambda i, j: (0, j)),   # X^T col tile (no in-kernel transpose)
            pl.BlockSpec((t, 1), lambda i, j: (i, 0)),   # row squared norms
            pl.BlockSpec((t, 1), lambda i, j: (i, 0)),   # row labels
            pl.BlockSpec((1, t), lambda i, j: (0, j)),   # col labels (lane-dense)
            pl.BlockSpec((1, t), lambda i, j: (0, j)),   # col squared norms (lane-dense)
        ],
        out_specs=pl.BlockSpec((1, 8, 128), lambda i, j: (i, 0, 0)),
        scratch_shapes=[pltpu.VMEM((t, t), jnp.float32)],
        compiler_params=pltpu.CompilerParams(
            dimension_semantics=("parallel", "arbitrary"),
            vmem_limit_bytes=vmem_limit),
    )(x, xt, rn, lr, lc, cn)

    # Per-row-tile partial sums -> mean over the original (unpadded) N x N matrix.
    return jnp.sum(out[:, 0, 0]) * jnp.float32(1.0 / (n * n))


def _reference(features, labels):
    # Pure-JAX reference replicating the PyTorch forward pass exactly.
    x = features.astype(jnp.float32)
    sq = jnp.sum(x * x, axis=-1, keepdims=True)
    sq_dist = jnp.maximum(sq + sq.T - 2.0 * (x @ x.T), 0.0)
    dist = jnp.sqrt(sq_dist)
    lab = labels.reshape(-1, 1)
    mask = (lab == lab.T).astype(jnp.float32)
    loss_pos = mask * dist ** 2
    loss_neg = (1.0 - mask) * jnp.maximum(MARGIN - dist, 0.0) ** 2
    return jnp.mean(loss_pos + loss_neg)


if __name__ == "__main__":
    key = jax.random.PRNGKey(0)
    k1, k2, k3, k4 = jax.random.split(key, 4)

    # Small shape consistent with the module's toy regime: batch=8, hidden=32.
    n, d = 8, 32
    feats = jax.random.normal(k1, (n, d), dtype=jnp.float32)
    labs = jax.random.randint(k2, (n,), 0, 3, dtype=jnp.int32)
    loss = jax.block_until_ready(custom_contrastive_loss(feats, labs))
    ref = _reference(feats, labs)
    assert jnp.allclose(loss, ref, rtol=1e-4, atol=1e-5), (loss, ref)

    # Larger, non-multiple batch with tile=128 to exercise the tiled (3x3) grid,
    # sentinel padding, and the per-row-tile partial-sum path.
    n2, d2 = 300, 64
    feats2 = jax.random.normal(k3, (n2, d2), dtype=jnp.float32)
    labs2 = jax.random.randint(k4, (n2,), 0, 10, dtype=jnp.int32)
    loss2 = jax.block_until_ready(custom_contrastive_loss(feats2, labs2, tile=128))
    ref2 = _reference(feats2, labs2)
    assert jnp.allclose(loss2, ref2, rtol=1e-3, atol=1e-3), (loss2, ref2)

    print("KERNEL_OK")
</pallas_src>

<mosaic_0001>
module attributes {stable_mosaic.version = 11 : i64} {
  func.func @_contrastive_loss_kernel(%arg0: i32, %arg1: i32, %arg2: memref<8x32xf32, #tpu.memory_space<vmem>>, %arg3: memref<32x8xf32, #tpu.memory_space<vmem>>, %arg4: memref<8x1xf32, #tpu.memory_space<vmem>>, %arg5: memref<8x1xi32, #tpu.memory_space<vmem>>, %arg6: memref<1x8xi32, #tpu.memory_space<vmem>>, %arg7: memref<1x8xf32, #tpu.memory_space<vmem>>, %arg8: memref<1x8x128xf32, #tpu.memory_space<vmem>>, %arg9: memref<8x8xf32, #tpu.memory_space<vmem>>) attributes {dimension_semantics = [#tpu.dimension_semantics<parallel>, #tpu.dimension_semantics<arbitrary>], iteration_bounds = array<i64: 1, 1>, scalar_prefetch = 0 : i64, scratch_operands = 1 : i64, tpu.core_type = #tpu.core_type<tc>, window_params = [{transform_indices = @transform_0, window_bounds = array<i64: 8, 32>}, {transform_indices = @transform_1, window_bounds = array<i64: 32, 8>}, {transform_indices = @transform_2, window_bounds = array<i64: 8, 1>}, {transform_indices = @transform_3, window_bounds = array<i64: 8, 1>}, {transform_indices = @transform_4, window_bounds = array<i64: 1, 8>}, {transform_indices = @transform_5, window_bounds = array<i64: 1, 8>}, {transform_indices = @transform_6, window_bounds = array<i64: 1, 8, 128>}]} {
    %c0_i32 = arith.constant 0 : i32
    %0 = arith.cmpi eq, %arg1, %c0_i32 : i32
    %1 = arith.extui %0 : i1 to i32
    %c0_i32_0 = arith.constant 0 : i32
    %2 = arith.cmpi ne, %1, %c0_i32_0 : i32
    scf.if %2 {
      %cst_22 = arith.constant 0.000000e+00 : f32
      %34 = vector.broadcast %cst_22 : f32 to vector<8x8xf32>
      %c0_23 = arith.constant 0 : index
      %c0_24 = arith.constant 0 : index
      %35 = vector.load %arg9[%c0_23, %c0_24] : memref<8x8xf32, #tpu.memory_space<vmem>>, vector<8x8xf32>
      tpu.vector_store %arg9[%c0_23, %c0_24], %34 {strides = array<i32>} : memref<8x8xf32, #tpu.memory_space<vmem>>, vector<8x8xf32>,
    } else {
    }
    %c0 = arith.constant 0 : index
    %c0_1 = arith.constant 0 : index
    %3 = vector.load %arg2[%c0, %c0_1] : memref<8x32xf32, #tpu.memory_space<vmem>>, vector<8x32xf32>
    %c0_2 = arith.constant 0 : index
    %c0_3 = arith.constant 0 : index
    %4 = vector.load %arg3[%c0_2, %c0_3] : memref<32x8xf32, #tpu.memory_space<vmem>>, vector<32x8xf32>
    %cst = arith.constant dense<0.000000e+00> : vector<8x8xf32>
    %5 = tpu.matmul %3, %4, %cst {dimension_numbers = #tpu.dot_dimension_numbers<[1], [0], [0], [1], [0, 0, 1, 1], [], []>} : vector<8x32xf32>, vector<32x8xf32>, vector<8x8xf32> -> vector<8x8xf32>
    %c0_4 = arith.constant 0 : index
    %c0_5 = arith.constant 0 : index
    %6 = vector.load %arg4[%c0_4, %c0_5] : memref<8x1xf32, #tpu.memory_space<vmem>>, vector<8x1xf32>
    %c0_6 = arith.constant 0 : index
    %c0_7 = arith.constant 0 : index
    %7 = vector.load %arg7[%c0_6, %c0_7] : memref<1x8xf32, #tpu.memory_space<vmem>>, vector<1x8xf32>
    %8 = vector.broadcast %6 : vector<8x1xf32> to vector<8x8xf32>
    %9 = vector.broadcast %7 : vector<1x8xf32> to vector<8x8xf32>
    %10 = arith.addf %8, %9 : vector<8x8xf32>
    %cst_8 = arith.constant 2.000000e+00 : f32
    %11 = vector.broadcast %cst_8 : f32 to vector<8x8xf32>
    %12 = arith.mulf %11, %5 : vector<8x8xf32>
    %13 = arith.subf %10, %12 : vector<8x8xf32>
    %cst_9 = arith.constant 0.000000e+00 : f32
    %14 = vector.broadcast %cst_9 : f32 to vector<8x8xf32>
    %15 = arith.maximumf %13, %14 : vector<8x8xf32>
    %16 = math.sqrt %15 : vector<8x8xf32>
    %cst_10 = arith.constant 1.000000e+00 : f32
    %17 = vector.broadcast %cst_10 : f32 to vector<8x8xf32>
    %18 = arith.subf %17, %16 : vector<8x8xf32>
    %cst_11 = arith.constant 0.000000e+00 : f32
    %19 = vector.broadcast %cst_11 : f32 to vector<8x8xf32>
    %20 = arith.maximumf %18, %19 : vector<8x8xf32>
    %c0_12 = arith.constant 0 : index
    %c0_13 = arith.constant 0 : index
    %21 = vector.load %arg5[%c0_12, %c0_13] : memref<8x1xi32, #tpu.memory_space<vmem>>, vector<8x1xi32>
    %c0_14 = arith.constant 0 : index
    %c0_15 = arith.constant 0 : index
    %22 = vector.load %arg6[%c0_14, %c0_15] : memref<1x8xi32, #tpu.memory_space<vmem>>, vector<1x8xi32>
    %23 = vector.broadcast %21 : vector<8x1xi32> to vector<8x8xi32>
    %24 = vector.broadcast %22 : vector<1x8xi32> to vector<8x8xi32>
    %25 = arith.cmpi eq, %23, %24 : vector<8x8xi32>
    %c0_16 = arith.constant 0 : index
    %c0_17 = arith.constant 0 : index
    %26 = vector.load %arg9[%c0_16, %c0_17] : memref<8x8xf32, #tpu.memory_space<vmem>>, vector<8x8xf32>
    %27 = arith.mulf %20, %20 : vector<8x8xf32>
    %28 = arith.select %25, %15, %27 : vector<8x8xi1>, vector<8x8xf32>
    %29 = arith.addf %26, %28 : vector<8x8xf32>
    %c0_18 = arith.constant 0 : index
    %c0_19 = arith.constant 0 : index
    %30 = vector.load %arg9[%c0_18, %c0_19] : memref<8x8xf32, #tpu.memory_space<vmem>>, vector<8x8xf32>
    tpu.vector_store %arg9[%c0_18, %c0_19], %29 {strides = array<i32>} : memref<8x8xf32, #tpu.memory_space<vmem>>, vector<8x8xf32>,
    %c0_i32_20 = arith.constant 0 : i32
    %31 = arith.cmpi eq, %arg1, %c0_i32_20 : i32
    %32 = arith.extui %31 : i1 to i32
    %c0_i32_21 = arith.constant 0 : i32
    %33 = arith.cmpi ne, %32, %c0_i32_21 : i32
    scf.if %33 {
      %c0_22 = arith.constant 0 : index
      %c0_23 = arith.constant 0 : index
      %34 = vector.load %arg9[%c0_22, %c0_23] : memref<8x8xf32, #tpu.memory_space<vmem>>, vector<8x8xf32>
      %35 = vector.shape_cast %34 : vector<8x8xf32> to vector<1x8x8xf32>
      %cst_24 = arith.constant dense<0.000000e+00> : vector<1xf32>
      %36 = vector.multi_reduction <add>, %35, %cst_24 [1, 2] : vector<1x8x8xf32> to vector<1xf32>
      %37 = vector.shape_cast %36 : vector<1xf32> to vector<1x1x1xf32>
      %38 = vector.extract %37[0, 0, 0] : f32 from vector<1x1x1xf32>
      %39 = vector.broadcast %38 : f32 to vector<1x8x128xf32>
      %c0_25 = arith.constant 0 : index
      %c0_26 = arith.constant 0 : index
      %c0_27 = arith.constant 0 : index
      %40 = vector.load %arg8[%c0_25, %c0_26, %c0_27] : memref<1x8x128xf32, #tpu.memory_space<vmem>>, vector<1x8x128xf32>
      tpu.vector_store %arg8[%c0_25, %c0_26, %c0_27], %39 {strides = array<i32>} : memref<1x8x128xf32, #tpu.memory_space<vmem>>, vector<1x8x128xf32>,
    } else {
    }
    return
  }
  func.func @transform_0(%arg0: i32, %arg1: i32) -> (i32, i32) {
    %c0_i32 = arith.constant 0 : i32
    %c0_i32_0 = arith.constant 0 : i32
    return %arg0, %c0_i32 : i32, i32
  }
  func.func @transform_1(%arg0: i32, %arg1: i32) -> (i32, i32) {
    %c0_i32 = arith.constant 0 : i32
    %c0_i32_0 = arith.constant 0 : i32
    return %c0_i32, %arg1 : i32, i32
  }
  func.func @transform_2(%arg0: i32, %arg1: i32) -> (i32, i32) {
    %c0_i32 = arith.constant 0 : i32
    %c0_i32_0 = arith.constant 0 : i32
    return %arg0, %c0_i32 : i32, i32
  }
  func.func @transform_3(%arg0: i32, %arg1: i32) -> (i32, i32) {
    %c0_i32 = arith.constant 0 : i32
    %c0_i32_0 = arith.constant 0 : i32
    return %arg0, %c0_i32 : i32, i32
  }
  func.func @transform_4(%arg0: i32, %arg1: i32) -> (i32, i32) {
    %c0_i32 = arith.constant 0 : i32
    %c0_i32_0 = arith.constant 0 : i32
    return %c0_i32, %arg1 : i32, i32
  }
  func.func @transform_5(%arg0: i32, %arg1: i32) -> (i32, i32) {
    %c0_i32 = arith.constant 0 : i32
    %c0_i32_0 = arith.constant 0 : i32
    return %c0_i32, %arg1 : i32, i32
  }
  func.func @transform_6(%arg0: i32, %arg1: i32) -> (i32, i32, i32) {
    %c0_i32 = arith.constant 0 : i32
    %c0_i32_0 = arith.constant 0 : i32
    %c0_i32_1 = arith.constant 0 : i32
    return %arg0, %c0_i32, %c0_i32_0 : i32, i32, i32
  }
}

</mosaic_0001>

<bundles_post_ra>
// kernel: tpu_custom_call.1
= control target key start
LH: loop header
LB: loop body
LE: loop exit
PB: predicated region body
PF: predicated region fallthrough
CT: control target
= control target key end

     0   :  { %vm28_vm0 = vcmask 64512   ;;  %v240_v3 = vmov 0.0|0.0   ;;  %v241_v6 = vmov 0.0   ;;  %vm242_vm1 = vmmov 0   ;;  %s322_s0 = inlined_call_operand.vmem [shape: f32[8,32], index: 0, kind: input, shape index: {}]   ;;  %s323_s1 = inlined_call_operand.vmem [shape: f32[32,8], index: 1, kind: input, shape index: {}]   ;;  %s324_s2 = inlined_call_operand.vmem [shape: f32[8,1], index: 2, kind: input, shape index: {}]   ;;  %s325_s3 = inlined_call_operand.vmem [shape: s32[8,1], index: 3, kind: input, shape index: {}]   ;;  %s326_s4 = inlined_call_operand.vmem [shape: s32[1,8], index: 4, kind: input, shape index: {}]   ;;  %s327_s5 = inlined_call_operand.vmem [shape: f32[1,8], index: 5, kind: input, shape index: {}]   ;;  %s328_s6 = inlined_call_operand.hbm [shape: f32[1,8,128], index: 6, kind: output, shape index: {}]  }
   0x1   :  { %v31_v0 = vld [vmem:[%s323_s1] sm:$0xff]  ;;  %v32_v1 = vld [vmem:[%s323_s1 + $0x8] sm:$0xff]  ;;  %v33_v2 = vld [vmem:[%s323_s1 + $0x10] sm:$0xff]  ;;  %200 = vmatprep.subr.bf16.mxu0 %v240_v3  ;;  %29 = vst.msk [vmem:[#allocation2] sm:$0xff] %vm28_vm0, %v241_v6  ;;  %197 = vmatprep.mubr.msk.f32.mxu0 %vm242_vm1, %v241_v6  ;;  %v243_v8 = vmov 0  }
   0x2   :  { %v201_v4 = vpack.c.bf16 %v32_v1, %v31_v0  ;;  %v34_v5 = vld [vmem:[%s323_s1 + $0x18] sm:$0xff]  ;;  %v109_v7 = vld [vmem:[%s324_s2] sm:$0xff]  ;;  %213 = vset.pattern.permute.xlu0 %v243_v8 }
   0x3   :  { %11 = vsyncpa [#allocation4], 0  ;;  %v204_v9 = vpack.c.bf16 %v34_v5, %v33_v2  ;;  %113 = vperm.xlu0 %213, %v109_v7   ;;  %v135_v10 = vld [vmem:[%s325_s3] sm:$0xff]  ;;  %vm35_vm2 = vcmask 261120  }
   0x4   :  { %202 = vmatpush3.bf16.msra.mxu0 %v201_v4  ;;  %v30_v11 = vld [vmem:[%s322_s0] sm:$0xff] }
   0x5   :  { %203 = vmatprep.subr.bf16.mxu0 %v240_v3  ;;  %v182_v12 = vld [vmem:[%s327_s5] ss:$0 sm:$0xff] }
   0x6   :  { %v183_v26 = vld [vmem:[%s326_s4] ss:$0 sm:$0xff]  ;;  %s244_s4 = smov [#allocation3]  }
   0x7   :  { %138 = vperm.xlu0 %213, %v135_v10   ;;  %s173_s5 = sshll.u32 %s244_s4, 4  ;;  %s174_s5 = int_to_ptr.vmem [resolvable:$true] %s173_s5 }
   0x8   :  { %205 = vmatpush3.bf16.msra.mxu0 %v204_v9  ;;  %v145_v29 = vld [vmem:[#allocation2] sm:$0xff]  ;;  %s216_s12 = scalar_lea.vmem %s174_s5, 128  ;;  %p221_p1 = scmp.lt.s32.totalorder %s174_s5, %s174_s5 }
   0x9   :  { %p217_p0 = scmp.ne.s32.totalorder %s174_s5, %s216_s12  ;;  %p222_p2 = scmp.lt.s32.totalorder %s216_s12, %s216_s12 }
   0xb   :  { %198 = vmatmul.mubr.msk.f32.vlgmr.msra.gmra.mrb[0].mxu0 %vm35_vm2, %v30_v11  ;;  %p223_p3 = por %p222_p2, %p221_p1 }
   0xd   :  { %p224_p4 = pnand %p223_p3, %p217_p0 }
  0x82   :  { %v114_v13 = vpop.permute.xlu0 %113 }
  0x83   :  { %v122_v14 = vadd.f32 %v182_v12, %v114_v13 }
  0x86   :  { %v139_v27 = vpop.permute.xlu0 %138 }
  0x87   :  { %vm144_vm5 = vcmp.eq.s32.totalorder %v139_v27, %v183_v26 }
  0xde   :  { %v105_v15 = vpop.f32.mrb[0].mxu0 }
  0xdf   :  { %v123_v16 = vmul.f32 2.0, %v105_v15  ;;  %v199_v17 = vpop.f32.mrb[1].mxu0 }
  0xe1   :  { %v124_v18 = vsub.f32 %v122_v14, %v123_v16 }
  0xe3   :  { %v125_v19 = vmax.f32 %v124_v18, 0.0 }
  0xe5   :  { %214 = vrsqrt.f32 %v125_v19  ;;  %vm128_vm3 = vcmp.eq.f32.partialorder %v125_v19, inf  ;;  %v131_v22 = vand.u32 2147483648, %v125_v19  ;;  %vm130_vm4 = vcmp.eq.f32.partialorder %v125_v19, 0.0 }
  0xef   :  { %v215_v20 = vpop.eup %214 }
  0xf0   :  { %v127_v21 = vmul.f32 %v215_v20, %v125_v19 }
  0xf2   :  { %v129_v23 = vsel %vm128_vm3, %v125_v19, %v127_v21 }
  0xf3   :  { %v132_v24 = vsel %vm130_vm4, %v131_v22, %v129_v23 }
  0xf4   :  { %v133_v25 = vsub.f32 1.0, %v132_v24 }
  0xf6   :  { %v134_v28 = vmax.f32 %v133_v25, 0.0 }
  0xf8   :  { %v146_v30 = vmul.f32 %v134_v28, %v134_v28 }
  0xfa   :  { %v147_v31 = vsel %vm144_vm5, %v125_v19, %v146_v30 }
  0xfb   :  { %v148_v32 = vadd.f32 %v147_v31, %v145_v29 }
  0xfd   :  { %150 = vst.msk [vmem:[#allocation2] sm:$0xff] %vm28_vm0, %v148_v32 }
 0x104   :  { %v154_v33 = vld [vmem:[#allocation2] sm:$0xff] }
 0x105   :  { %v155_v34 = vsel %vm28_vm0, %v154_v33, 0.0 }
 0x106   :  { %156 = vadd.xlane.f32.xlu1 %v155_v34 }
 0x193   :  { %v157_v35 = vpop.xlane.xlu1 %156 }
 0x194   :  { %v158_v36 = vrot.slane %v157_v35, 4 }
 0x196   :  { %v159_v37 = vadd.f32 %v158_v36, %v157_v35 }
 0x198   :  { %v160_v38 = vrot.slane %v159_v37, 2 }
 0x19a   :  { %v161_v39 = vadd.f32 %v160_v38, %v159_v37 }
 0x19c   :  { %v162_v40 = vrot.slane %v161_v39, 1 }
 0x19e   :  { %v163_v41 = vadd.f32 %v162_v40, %v161_v39 }
 0x1a0   :  { %206 = vpush %v163_v41 }
 0x1d1   :  { %s207_s11 = spop %206 }
 0x1d2   :  { %v165_v42 = vstv %s207_s11 }
 0x1d3   :  { %166 = vst [vmem:[#allocation3] sm:$0xff] %v165_v42 }
 0x1d4   :  { %227 = shalt.err (!%p224_p4)
}
 0x1d5   :  { %s228_s15 = scalar_lea.hbm %s328_s6, 128 }
 0x1d6   :  { %p229_p5 = scmp.ne.s32.totalorder %s328_s6, %s228_s15  ;;  %p232_p6 = scmp.lt.u32.totalorder %s228_s15, %s328_s6 }
 0x1d8   :  { %p234_p7 = pnand %p232_p6, %p229_p5 }
 0x1da   :  { %237 = shalt.err (!%p234_p7)
}
 0x1db   :  { %176 = dma.vmem_to_hbm [thread:$0]  %s174_s5, 128, %s328_s6, [#allocation4]  }
 0x1dc   :  { %238 = dma.done.wait [#allocation4], 128  }
 0x1dd   :  { %239 = vsyncadd [#allocation4], 4294967168 }
 0x1de   :  { %180 = vsyncpa [#allocation4], 1 }

</bundles_post_ra>
